<compile_context>
chip_gen: v5e
topology: v5e:2x2
jax: 0.10.0
libtpu: 0.0.40
codegen_flags: <defaults>
</compile_context>

<pallas_src>
import jax
import jax.numpy as jnp
from jax.experimental import pallas as pl
from jax.experimental.pallas import tpu as pltpu

_HIDDEN = 128   # per-branch hidden width (from the PyTorch spec)
_LANE = 128     # TPU lane width


def _round_up(x, m):
    return ((x + m - 1) // m) * m


def _fcomb_kernel(x_ref, wh_ref, bh_ref, wo_ref, bo_ref, o_ref):
    # In-kernel cast to the weight compute dtype (no-op for f32; free VPU op
    # for bf16 deployments — avoids an extra wrapper-side HBM round trip).
    x = x_ref[...].astype(wh_ref.dtype)
    # Single fused hidden layer for both branches: (TB, 256), f32 accumulation.
    h = jnp.dot(x, wh_ref[...], preferred_element_type=jnp.float32)
    h = jnp.maximum(h + bh_ref[...], 0.0)                       # bias + ReLU (f32)
    # Fused output layer on the lane-padded weight: (TB, OUT_PAD), f32 acc.
    out = jnp.dot(h.astype(wo_ref.dtype), wo_ref[...],
                  preferred_element_type=jnp.float32) + bo_ref[...]
    # Store only the real out_features columns (masked vst; avoids writing
    # padded lanes back to HBM and a separate slice pass after the kernel).
    o_ref[...] = out[:, :o_ref.shape[1]].astype(o_ref.dtype)


def init_params(key, num_filters, latent_dim, out_features, hidden=_HIDDEN,
                dtype=jnp.float32):
    """Same shapes / init style as the PyTorch module (W stored as (in, out))."""
    ks = jax.random.split(key, 8)

    def lin(kw, kb, fan_in, fan_out):
        bound = 1.0 / jnp.sqrt(fan_in)
        w = jax.random.uniform(kw, (fan_in, fan_out), dtype, -bound, bound)
        b = jax.random.uniform(kb, (1, fan_out), dtype, -bound, bound)
        return w, b

    w1, b1 = lin(ks[0], ks[1], num_filters + latent_dim, hidden)
    w2, b2 = lin(ks[2], ks[3], hidden, out_features)
    w3, b3 = lin(ks[4], ks[5], num_filters, hidden)
    w4, b4 = lin(ks[6], ks[7], hidden, out_features)
    return (w1, b1, w2, b2, w3, b3, w4, b4)


def pack_params(params, num_filters, out_features, compute_dtype=jnp.float32):
    """One-time algebraic fusion + lane padding of the weights.

    compute_dtype=jnp.bfloat16 halves weight HBM/VMEM traffic on v6e/v7x
    (f32 accumulation is kept inside the kernel)."""
    w1, b1, w2, b2, w3, b3, w4, b4 = params
    F = num_filters
    L = w1.shape[0] - F

    # Fused hidden weight over the concatenated input [fm | z]:
    #   columns [0:128)   -> mlp  branch (uses all F+L inputs)
    #   columns [128:256) -> mlp2 branch (uses only the first F inputs)
    W_h = jnp.concatenate(
        [w1, jnp.concatenate([w3, jnp.zeros((L, _HIDDEN), w1.dtype)], axis=0)],
        axis=1)                                                   # (F+L, 256)
    b_h = jnp.concatenate([b1, b3], axis=1)                       # (1, 256)
    W_o = jnp.concatenate([w2, w4], axis=0)                       # (256, out)
    b_o = b2 + b4                                                 # (1, out)

    # Pad output weight/bias columns to the lane width for the MXU matmul.
    # The kernel slices the *store* back down to out_features, so no padded
    # columns ever reach HBM.
    out_pad = _round_up(out_features, _LANE)
    W_o = jnp.pad(W_o, ((0, 0), (0, out_pad - out_features)))
    b_o = jnp.pad(b_o, ((0, 0), (0, out_pad - out_features)))

    W_h = W_h.astype(compute_dtype)
    W_o = W_o.astype(compute_dtype)
    b_h = b_h.astype(jnp.float32)   # post-accumulation math stays f32 (v5e VPU)
    b_o = b_o.astype(jnp.float32)
    return (W_h, b_h, W_o, b_o)


def fcomb_forward(feature_map, z, packed, out_features, *, block_b=2048):
    """feature_map: (B, F), z: (B, L).  Returns (B, out_features)."""
    W_h, b_h, W_o, b_o = packed
    B, F = feature_map.shape
    L = z.shape[1]
    K = F + L
    H2 = W_h.shape[1]            # 256
    OUTP = W_o.shape[1]          # out_features padded to lane width

    # Single concatenated activation -> one hidden-layer matmul in the kernel.
    # (No dtype cast here; the kernel casts after load if weights are bf16.)
    x = jnp.concatenate([feature_map, z], axis=1)                 # (B, F+L)

    # Batch tiling:
    #  * tiny B: one tile (block dim == full array dim is a legal block shape).
    #  * otherwise: >=2 tiles of at most block_b rows (multiple of 8), so the
    #    "parallel" axis can shard across both v7x TensorCores and per-step
    #    grid overhead is amortized.  Ragged last tile is handled by Pallas
    #    partial blocks (no wrapper-side padding copies).
    if B <= 16:
        tb = B
    else:
        tb = min(block_b, _round_up(pl.cdiv(B, 2), 8))
    grid = (pl.cdiv(B, tb),)

    in_itemsize = jnp.dtype(x.dtype).itemsize
    flops = 2 * B * (K * H2 + H2 * OUTP)
    bytes_accessed = (
        B * K * in_itemsize
        + sum(int(a.size) * a.dtype.itemsize for a in packed)
        + B * out_features * jnp.dtype(feature_map.dtype).itemsize)

    out = pl.pallas_call(
        _fcomb_kernel,
        out_shape=jax.ShapeDtypeStruct((B, out_features), feature_map.dtype),
        grid_spec=pltpu.PrefetchScalarGridSpec(
            num_scalar_prefetch=0,
            grid=grid,
            in_specs=[
                pl.BlockSpec((tb, K), lambda i: (i, 0)),        # [fm | z]
                # Weights / biases: constant index_maps -> fetched once and
                # kept VMEM-resident across the whole grid.
                pl.BlockSpec(W_h.shape, lambda i: (0, 0)),
                pl.BlockSpec(b_h.shape, lambda i: (0, 0)),
                pl.BlockSpec(W_o.shape, lambda i: (0, 0)),
                pl.BlockSpec(b_o.shape, lambda i: (0, 0)),
            ],
            out_specs=pl.BlockSpec((tb, out_features), lambda i: (i, 0)),
        ),
        compiler_params=pltpu.CompilerParams(
            dimension_semantics=("parallel",),
            # Headroom for block_b >= 4096 on v5e (16 MiB scoped default);
            # matches the v6e/v7x default so it is harmless elsewhere.
            vmem_limit_bytes=32 * 1024 * 1024),
        cost_estimate=pl.CostEstimate(
            flops=flops, transcendentals=0, bytes_accessed=bytes_accessed),
    )(x, W_h, b_h, W_o, b_o)

    return out


def fcomb_reference(feature_map, z, params):
    """Pure-JAX reference matching the PyTorch forward."""
    w1, b1, w2, b2, w3, b3, w4, b4 = params
    xc = jnp.concatenate([feature_map, z], axis=1)
    o1 = jnp.maximum(xc @ w1 + b1, 0.0) @ w2 + b2
    o2 = jnp.maximum(feature_map @ w3 + b3, 0.0) @ w4 + b4
    return o1 + o2


if __name__ == "__main__":
    num_filters, latent_dim, out_features = 32, 8, 4

    key = jax.random.PRNGKey(0)
    k_fm, k_z, k_p = jax.random.split(key, 3)
    params = init_params(k_p, num_filters, latent_dim, out_features)

    # One-time weight packing (use compute_dtype=jnp.bfloat16 on v6e/v7x for
    # memory-bound deployments; f32 here to compare tightly against reference).
    packed = pack_params(params, num_filters, out_features,
                         compute_dtype=jnp.float32)

    # Small single-tile batch (matches the module-scale example sizes).
    B = 8
    feature_map = jax.random.normal(k_fm, (B, num_filters), jnp.float32)
    z = jax.random.normal(k_z, (B, latent_dim), jnp.float32)
    out = jax.block_until_ready(
        fcomb_forward(feature_map, z, packed, out_features))
    ref = fcomb_reference(feature_map, z, params)
    assert out.shape == (B, out_features)
    assert jnp.allclose(out, ref, atol=1e-4, rtol=1e-4)

    # Exercise the multi-tile "parallel" grid path with a ragged last block.
    B2 = 40
    fm2 = jax.random.normal(k_fm, (B2, num_filters), jnp.float32)
    z2 = jax.random.normal(k_z, (B2, latent_dim), jnp.float32)
    out2 = jax.block_until_ready(
        fcomb_forward(fm2, z2, packed, out_features))
    ref2 = fcomb_reference(fm2, z2, params)
    assert out2.shape == (B2, out_features)
    assert jnp.allclose(out2, ref2, atol=1e-4, rtol=1e-4)

    print("KERNEL_OK")
</pallas_src>

<mosaic_0001>
module attributes {stable_mosaic.version = 11 : i64} {
  func.func @_fcomb_kernel(%arg0: i32, %arg1: memref<8x40xf32, #tpu.memory_space<vmem>>, %arg2: memref<40x256xf32, #tpu.memory_space<vmem>>, %arg3: memref<1x256xf32, #tpu.memory_space<vmem>>, %arg4: memref<256x128xf32, #tpu.memory_space<vmem>>, %arg5: memref<1x128xf32, #tpu.memory_space<vmem>>, %arg6: memref<8x4xf32, #tpu.memory_space<vmem>>) attributes {dimension_semantics = [#tpu.dimension_semantics<parallel>], iteration_bounds = array<i64: 1>, scalar_prefetch = 0 : i64, scratch_operands = 0 : i64, tpu.core_type = #tpu.core_type<tc>, window_params = [{transform_indices = @transform_0, window_bounds = array<i64: 8, 40>}, {pipeline_mode = #tpu.pipeline_mode<synchronous>, transform_indices = @transform_1, window_bounds = array<i64: 40, 256>}, {pipeline_mode = #tpu.pipeline_mode<synchronous>, transform_indices = @transform_2, window_bounds = array<i64: 1, 256>}, {pipeline_mode = #tpu.pipeline_mode<synchronous>, transform_indices = @transform_3, window_bounds = array<i64: 256, 128>}, {pipeline_mode = #tpu.pipeline_mode<synchronous>, transform_indices = @transform_4, window_bounds = array<i64: 1, 128>}, {transform_indices = @transform_5, window_bounds = array<i64: 8, 4>}]} {
    %c0 = arith.constant 0 : index
    %c0_0 = arith.constant 0 : index
    %0 = vector.load %arg1[%c0, %c0_0] : memref<8x40xf32, #tpu.memory_space<vmem>>, vector<8x40xf32>
    %c0_1 = arith.constant 0 : index
    %c0_2 = arith.constant 0 : index
    %1 = vector.load %arg2[%c0_1, %c0_2] : memref<40x256xf32, #tpu.memory_space<vmem>>, vector<40x256xf32>
    %cst = arith.constant dense<0.000000e+00> : vector<8x256xf32>
    %2 = tpu.matmul %0, %1, %cst {dimension_numbers = #tpu.dot_dimension_numbers<[1], [0], [0], [1], [0, 0, 1, 1], [], []>} : vector<8x40xf32>, vector<40x256xf32>, vector<8x256xf32> -> vector<8x256xf32>
    %c0_3 = arith.constant 0 : index
    %c0_4 = arith.constant 0 : index
    %3 = vector.load %arg3[%c0_3, %c0_4] : memref<1x256xf32, #tpu.memory_space<vmem>>, vector<1x256xf32>
    %4 = vector.broadcast %3 : vector<1x256xf32> to vector<8x256xf32>
    %5 = arith.addf %2, %4 : vector<8x256xf32>
    %cst_5 = arith.constant 0.000000e+00 : f32
    %6 = vector.broadcast %cst_5 : f32 to vector<8x256xf32>
    %7 = arith.maximumf %5, %6 : vector<8x256xf32>
    %c0_6 = arith.constant 0 : index
    %c0_7 = arith.constant 0 : index
    %8 = vector.load %arg4[%c0_6, %c0_7] : memref<256x128xf32, #tpu.memory_space<vmem>>, vector<256x128xf32>
    %cst_8 = arith.constant dense<0.000000e+00> : vector<8x128xf32>
    %9 = tpu.matmul %7, %8, %cst_8 {dimension_numbers = #tpu.dot_dimension_numbers<[1], [0], [0], [1], [0, 0, 1, 1], [], []>} : vector<8x256xf32>, vector<256x128xf32>, vector<8x128xf32> -> vector<8x128xf32>
    %c0_9 = arith.constant 0 : index
    %c0_10 = arith.constant 0 : index
    %10 = vector.load %arg5[%c0_9, %c0_10] : memref<1x128xf32, #tpu.memory_space<vmem>>, vector<1x128xf32>
    %11 = vector.broadcast %10 : vector<1x128xf32> to vector<8x128xf32>
    %12 = arith.addf %9, %11 : vector<8x128xf32>
    %13 = vector.extract_strided_slice %12 {offsets = [0, 0], sizes = [8, 4], strides = [1, 1]} : vector<8x128xf32> to vector<8x4xf32>
    %c0_11 = arith.constant 0 : index
    %c0_12 = arith.constant 0 : index
    %14 = vector.load %arg6[%c0_11, %c0_12] : memref<8x4xf32, #tpu.memory_space<vmem>>, vector<8x4xf32>
    tpu.vector_store %arg6[%c0_11, %c0_12], %13 {strides = array<i32>} : memref<8x4xf32, #tpu.memory_space<vmem>>, vector<8x4xf32>,
    return
  }
  func.func @transform_0(%arg0: i32) -> (i32, i32) {
    %c0_i32 = arith.constant 0 : i32
    %c0_i32_0 = arith.constant 0 : i32
    return %arg0, %c0_i32 : i32, i32
  }
  func.func @transform_1(%arg0: i32) -> (i32, i32) {
    %c0_i32 = arith.constant 0 : i32
    %c0_i32_0 = arith.constant 0 : i32
    %c0_i32_1 = arith.constant 0 : i32
    return %c0_i32, %c0_i32_0 : i32, i32
  }
  func.func @transform_2(%arg0: i32) -> (i32, i32) {
    %c0_i32 = arith.constant 0 : i32
    %c0_i32_0 = arith.constant 0 : i32
    %c0_i32_1 = arith.constant 0 : i32
    return %c0_i32, %c0_i32_0 : i32, i32
  }
  func.func @transform_3(%arg0: i32) -> (i32, i32) {
    %c0_i32 = arith.constant 0 : i32
    %c0_i32_0 = arith.constant 0 : i32
    %c0_i32_1 = arith.constant 0 : i32
    return %c0_i32, %c0_i32_0 : i32, i32
  }
  func.func @transform_4(%arg0: i32) -> (i32, i32) {
    %c0_i32 = arith.constant 0 : i32
    %c0_i32_0 = arith.constant 0 : i32
    %c0_i32_1 = arith.constant 0 : i32
    return %c0_i32, %c0_i32_0 : i32, i32
  }
  func.func @transform_5(%arg0: i32) -> (i32, i32) {
    %c0_i32 = arith.constant 0 : i32
    %c0_i32_0 = arith.constant 0 : i32
    return %arg0, %c0_i32 : i32, i32
  }
}

</mosaic_0001>

<bundles_post_ra>
// kernel: tpu_custom_call.1
= control target key start
LH: loop header
LB: loop body
LE: loop exit
PB: predicated region body
PF: predicated region fallthrough
CT: control target
= control target key end

     0   :  { %10 = vsyncpa [#allocation3], 0  ;;  %s396_s0 = inlined_call_operand.hbm [shape: f32[8,40], index: 0, kind: input, shape index: {}]   ;;  %s397_s1 = inlined_call_operand.hbm [shape: f32[40,256], index: 1, kind: input, shape index: {}]   ;;  %s398_s2 = inlined_call_operand.hbm [shape: f32[1,256], index: 2, kind: input, shape index: {}]   ;;  %s399_s3 = inlined_call_operand.hbm [shape: f32[256,128], index: 3, kind: input, shape index: {}]   ;;  %s400_s4 = inlined_call_operand.vmem [shape: f32[1,128], index: 4, kind: input, shape index: {}]   ;;  %s401_s5 = inlined_call_operand.vmem [shape: f32[8,4], index: 5, kind: output, shape index: {}]  }
   0x1   :  { %11 = vsyncpa [#allocation5], 0  ;;  %s28_s20 = sshll.u32 %s397_s1, 4  ;;  %s29_s20 = int_to_ptr.hbm [resolvable:$true] %s28_s20 }
   0x2   :  { %12 = vsyncpa [#allocation8], 0  ;;  %s340_s21 = smov [#allocation4]   ;;  %s18_s25 = sshll.u32 %s396_s0, 4  ;;  %s19_s25 = int_to_ptr.hbm [resolvable:$true] %s18_s25 }
   0x3   :  { %s30_s22 = sshll.u32 %s340_s21, 4  ;;  %s341_s26 = smov 256   ;;  %s31_s22 = int_to_ptr.vmem [resolvable:$true] %s30_s22 }
   0x4   :  { %s342_s27 = smov 16   ;;  %s343_s28 = smov [#allocation2]  }
   0x5   :  { %36 = dma.hbm_to_vmem [thread:$0]  %s29_s20, 1280, %s31_s22, [#allocation5], %s341_s26, %s341_s26, %s342_s27  }
   0x6   :  { %s20_s29 = sshll.u32 %s343_s28, 4  ;;  %s42_s7 = sshll.u32 %s398_s2, 4  ;;  %s21_s29 = int_to_ptr.vmem [resolvable:$true] %s20_s29  ;;  %s43_s7 = int_to_ptr.hbm [resolvable:$true] %s42_s7 }
   0x7   :  { %23 = dma.hbm_to_vmem [thread:$0]  %s19_s25, 128, %s21_s29, [#allocation3]  }
   0x8   :  { %s52_s9 = sshll.u32 %s399_s3, 4  ;;  %s344_s10 = smov [#allocation6]   ;;  %s53_s9 = int_to_ptr.hbm [resolvable:$true] %s52_s9 }
   0x9   :  { %s44_s11 = sshll.u32 %s344_s10, 4  ;;  %s345_s0 = smov [#allocation7]   ;;  %s45_s11 = int_to_ptr.vmem [resolvable:$true] %s44_s11 }
   0xa   :  { %47 = dma.hbm_to_vmem [thread:$0]  %s43_s7, 32, %s45_s11, [#allocation5]  }
   0xb   :  { %s54_s12 = sshll.u32 %s345_s0, 4  ;;  %s346_s13 = smov 128   ;;  %s55_s12 = int_to_ptr.vmem [resolvable:$true] %s54_s12 }
   0xc   :  { %s347_s14 = smov 8  }
   0xd   :  { %60 = dma.hbm_to_vmem [thread:$0]  %s53_s9, 4096, %s55_s12, [#allocation8], %s346_s13, %s346_s13, %s347_s14  }
   0xe   :  { %334 = dma.done.wait [#allocation3], 128  }
   0xf   :  { %335 = vsyncadd [#allocation3], 4294967168 }
  0x10   :  { %336 = dma.done.wait [#allocation5], 1312  }
  0x11   :  { %337 = vsyncadd [#allocation5], 4294965984 }
  0x12   :  { %338 = dma.done.wait [#allocation8], 4096  }
  0x13   :  { %339 = vsyncadd [#allocation8], 4294963200  ;;  %v88_v0 = vld [vmem:[#allocation4 + $0x40] sm:$0xff]  ;;  %v86_v1 = vld [vmem:[#allocation4 + $0x30] sm:$0xff]  ;;  %vm96_vm0 = vcmask 326656   ;;  %vm218_vm1 = vcmask 31744  }
  0x14   :  { %v89_v2 = vld [vmem:[#allocation4 + $0x48] sm:$0xff]  ;;  %111 = vmatpush.msra.mxu0 %v88_v0  ;;  %v87_v3 = vld [vmem:[#allocation4 + $0x38] sm:$0xff]  ;;  %v84_v4 = vld [vmem:[#allocation4 + $0x20] sm:$0xff] }
  0x15   :  { %131 = vmatpush.msra.mxu1 %v89_v2  ;;  %v85_v5 = vld [vmem:[#allocation4 + $0x28] sm:$0xff]  ;;  %v82_v6 = vld [vmem:[#allocation4 + $0x10] sm:$0xff]  ;;  %v83_v8 = vld [vmem:[#allocation4 + $0x18] sm:$0xff] }
  0x16   :  { %112 = vmatpush.msra.mxu0 %v86_v1  ;;  %v157_v7 = vld [vmem:[#allocation7 + $0x78] sm:$0xff]  ;;  %v156_v9 = vld [vmem:[#allocation7 + $0x70] sm:$0xff]  ;;  %v155_v11 = vld [vmem:[#allocation7 + $0x68] sm:$0xff] }
  0x17   :  { %132 = vmatpush.msra.mxu1 %v87_v3  ;;  %178 = vmatpush.msra.mxu2 %v157_v7  ;;  %v173_v10 = vld [vmem:[#allocation7 + $0xf8] sm:$0xff]  ;;  %v172_v12 = vld [vmem:[#allocation7 + $0xf0] sm:$0xff]  ;;  %v79_v15 = vld [vmem:[#allocation2] sm:$0xff] }
  0x18   :  { %113 = vmatpush.msra.mxu0 %v84_v4  ;;  %v80_v13 = vld [vmem:[#allocation4] sm:$0xff]  ;;  %v81_v14 = vld [vmem:[#allocation4 + $0x8] sm:$0xff]  ;;  %198 = vmatpush.msra.mxu3 %v173_v10  ;;  %v154_v16 = vld [vmem:[#allocation7 + $0x60] sm:$0xff] }
  0x19   :  { %133 = vmatpush.msra.mxu1 %v85_v5  ;;  %179 = vmatpush.msra.mxu2 %v156_v9  ;;  %v171_v17 = vld [vmem:[#allocation7 + $0xe8] sm:$0xff]  ;;  %v153_v18 = vld [vmem:[#allocation7 + $0x58] sm:$0xff]  ;;  %v170_v19 = vld [vmem:[#allocation7 + $0xe0] sm:$0xff] }
  0x1a   :  { %114 = vmatpush.msra.mxu0 %v82_v6  ;;  %199 = vmatpush.msra.mxu3 %v172_v12  ;;  %v152_v20 = vld [vmem:[#allocation7 + $0x50] sm:$0xff]  ;;  %v169_v21 = vld [vmem:[#allocation7 + $0xd8] sm:$0xff]  ;;  %v151_v22 = vld [vmem:[#allocation7 + $0x48] sm:$0xff] }
  0x1b   :  { %134 = vmatpush.msra.mxu1 %v83_v8  ;;  %180 = vmatpush.msra.mxu2 %v155_v11  ;;  %v168_v23 = vld [vmem:[#allocation7 + $0xd0] sm:$0xff]  ;;  %v150_v24 = vld [vmem:[#allocation7 + $0x40] sm:$0xff]  ;;  %v167_v25 = vld [vmem:[#allocation7 + $0xc8] sm:$0xff] }
  0x1c   :  { %115 = vmatpush.msra.mxu0 %v80_v13  ;;  %200 = vmatpush.msra.mxu3 %v171_v17  ;;  %v149_v26 = vld [vmem:[#allocation7 + $0x38] sm:$0xff]  ;;  %v166_v27 = vld [vmem:[#allocation7 + $0xc0] sm:$0xff]  ;;  %v148_v28 = vld [vmem:[#allocation7 + $0x30] sm:$0xff] }
  0x1d   :  { %135 = vmatpush.msra.mxu1 %v81_v14  ;;  %227 = vmatmul.msk.f32.vlgmr.msra.gmra.mxu0 %vm96_vm0, %v79_v15  ;;  %v165_v29 = vld [vmem:[#allocation7 + $0xb8] sm:$0xff]  ;;  %v147_v30 = vld [vmem:[#allocation7 + $0x28] sm:$0xff]  ;;  %v164_v31 = vld [vmem:[#allocation7 + $0xb0] sm:$0xff] }
  0x1e   :  { %228 = vmatmul.msk.f32.vlgmr.msra.gmra.mxu1 %vm96_vm0, %v79_v15  ;;  %181 = vmatpush.msra.mxu2 %v154_v16  ;;  %v146_v32 = vld [vmem:[#allocation7 + $0x20] sm:$0xff]  ;;  %v163_v33 = vld [vmem:[#allocation7 + $0xa8] sm:$0xff]  ;;  %v145_v34 = vld [vmem:[#allocation7 + $0x18] sm:$0xff] }
  0x1f   :  { %201 = vmatpush.msra.mxu3 %v170_v19  ;;  %v162_v35 = vld [vmem:[#allocation7 + $0xa0] sm:$0xff]  ;;  %v144_v36 = vld [vmem:[#allocation7 + $0x10] sm:$0xff]  ;;  %v161_v37 = vld [vmem:[#allocation7 + $0x98] sm:$0xff] }
  0x20   :  { %182 = vmatpush.msra.mxu2 %v153_v18  ;;  %v143_v38 = vld [vmem:[#allocation7 + $0x8] sm:$0xff]  ;;  %v160_v39 = vld [vmem:[#allocation7 + $0x90] sm:$0xff]  ;;  %v142_v40 = vld [vmem:[#allocation7] sm:$0xff] }
  0x21   :  { %202 = vmatpush.msra.mxu3 %v169_v21  ;;  %v159_v41 = vld [vmem:[#allocation7 + $0x88] sm:$0xff]  ;;  %v158_v42 = vld [vmem:[#allocation7 + $0x80] sm:$0xff]  ;;  %v90_v43 = vld [vmem:[#allocation6] sm:$0x3] }
  0x22   :  { %183 = vmatpush.msra.mxu2 %v152_v20  ;;  %v92_v44 = vperm.slane %v90_v43, 0  ;;  %v93_v45 = vperm.slane %v90_v43, 1  ;;  %v237_v52 = vld [vmem:[%s400_s4] ss:$0 sm:$0xff] }
  0x23   :  { %203 = vmatpush.msra.mxu3 %v168_v23 }
  0x24   :  { %184 = vmatpush.msra.mxu2 %v151_v22 }
  0x25   :  { %204 = vmatpush.msra.mxu3 %v167_v25 }
  0x26   :  { %185 = vmatpush.msra.mxu2 %v150_v24 }
  0x27   :  { %205 = vmatpush.msra.mxu3 %v166_v27 }
  0x28   :  { %186 = vmatpush.msra.mxu2 %v149_v26 }
  0x29   :  { %206 = vmatpush.msra.mxu3 %v165_v29 }
  0x2a   :  { %187 = vmatpush.msra.mxu2 %v148_v28 }
  0x2b   :  { %207 = vmatpush.msra.mxu3 %v164_v31 }
  0x2c   :  { %188 = vmatpush.msra.mxu2 %v147_v30 }
  0x2d   :  { %208 = vmatpush.msra.mxu3 %v163_v33 }
  0x2e   :  { %189 = vmatpush.msra.mxu2 %v146_v32 }
  0x2f   :  { %209 = vmatpush.msra.mxu3 %v162_v35 }
  0x30   :  { %190 = vmatpush.msra.mxu2 %v145_v34 }
  0x31   :  { %210 = vmatpush.msra.mxu3 %v161_v37 }
  0x32   :  { %191 = vmatpush.msra.mxu2 %v144_v36 }
  0x33   :  { %211 = vmatpush.msra.mxu3 %v160_v39 }
  0x34   :  { %192 = vmatpush.msra.mxu2 %v143_v38 }
  0x35   :  { %212 = vmatpush.msra.mxu3 %v159_v41 }
  0x36   :  { %193 = vmatpush.msra.mxu2 %v142_v40 }
  0x37   :  { %213 = vmatpush.msra.mxu3 %v158_v42 }
  0x9a   :  { %v117_v46 = vpop.f32.mrf.mxu0 }
  0x9b   :  { %v137_v47 = vpop.f32.mrf.mxu1  ;;  %v118_v48 = vadd.f32 %v117_v46, %v92_v44 }
  0x9c   :  { %v138_v49 = vadd.f32 %v137_v47, %v93_v45 }
  0x9d   :  { %v140_v50 = vmax.f32 %v118_v48, 0.0 }
  0x9e   :  { %v141_v51 = vmax.f32 %v138_v49, 0.0 }
  0x9f   :  { %194 = vmatmul.f32.vlgmr.msra.gmra.mxu2 %v140_v50 }
  0xa0   :  { %214 = vmatmul.f32.vlgmr.msra.gmra.mxu3 %v141_v51 }
 0x122   :  { %v195_v53 = vpop.f32.mrf.mxu2 }
 0x123   :  { %v215_v54 = vpop.f32.mrf.mxu3  ;;  %v196_v55 = vadd.f32 %v237_v52, %v195_v53 }
 0x125   :  { %v216_v56 = vadd.f32 %v215_v54, %v196_v55 }
 0x127   :  { %219 = vst.msk [vmem:[%s401_s5] sm:$0xff] %vm218_vm1, %v216_v56 }
 0x128   :  { %224 = vsyncpa [#allocation3], 1 }
 0x129   :  { %225 = vsyncpa [#allocation5], 1 }
 0x12a   :  { %226 = vsyncpa [#allocation8], 1 }

</bundles_post_ra>
